<compile_context>
chip_gen: v5e
topology: v5e:2x2
jax: 0.10.0
libtpu: 0.0.40
codegen_flags: <defaults>
</compile_context>

<pallas_src>
import functools

import jax
import jax.numpy as jnp
from jax.experimental import pallas as pl
from jax.experimental.pallas import tpu as pltpu


def _round_up(x, m):
    return ((x + m - 1) // m) * m


def _leaky_relu(x, negative_slope=0.01):
    # F.leaky_relu default negative_slope = 0.01
    return jnp.where(x > 0, x, negative_slope * x)


def critic_kernel(
    state_ref, action_ref,
    w1_ref, b1_ref,
    w2s_ref, w2a_ref, b2_ref,
    w3_ref, b3_ref,
    w4_ref, b4_ref,
    out_ref,
):
    f32 = jnp.float32
    bf16 = jnp.bfloat16

    # f32 activations in; bf16 cast happens here (VPU slack), halving nothing
    # on HBM but keeping the MXU in its fast bf16 mode with f32 accumulation.
    state = state_ref[...].astype(bf16)      # (TB, S)
    action = action_ref[...]                 # (TB, A) f32 — stays on the VPU

    # fcs1 + leaky_relu
    xs = jnp.dot(state, w1_ref[...], preferred_element_type=f32)
    xs = _leaky_relu(xs + b1_ref[...])

    # fc2 on concat([xs, action], 1) == xs @ W2_xs + action @ W2_a + b2.
    # The K=A (=4) action term is NOT an MXU matmul: A broadcast VPU FMAs
    # instead (frees the MXU push slot and the awkward 4-lane operand layout).
    x = jnp.dot(xs.astype(bf16), w2s_ref[...], preferred_element_type=f32) + b2_ref[...]
    num_a = action_ref.shape[1]              # static
    for k in range(num_a):
        x = x + action[:, k:k + 1] * w2a_ref[k:k + 1, :]
    x = _leaky_relu(x)

    # fc3 + leaky_relu
    x = _leaky_relu(
        jnp.dot(x.astype(bf16), w3_ref[...], preferred_element_type=f32)
        + b3_ref[...]
    )

    # fc4 (out_features=1): q[i] = sum_j x[i, j] * w4[j] + b4, emitted as a
    # lane-dense (1, TB) row: transpose (XLU) + sublane reduce (VPU/XLU).
    xt = jnp.transpose(x)                               # (fc3, TB) f32
    q = jnp.sum(xt * w4_ref[...], axis=0, keepdims=True) + b4_ref[...]   # (1, TB)
    out_ref[...] = q.astype(out_ref.dtype)


@functools.partial(jax.jit, static_argnames=("block_b",))
def critic_forward(state, action, params, *, block_b=1024):
    """Q(state, action). state: (B, state_size) f32, action: (B, action_size) f32.

    block_b is a sweep parameter (512–2048 recommended for large batches).
    """
    B, S = state.shape
    A = action.shape[1]
    w1, b1, w2s, w2a, b2, w3, b3, w4, b4 = params

    # Tile selection:
    #  * small batch  -> single tile TB = round_up(B, 8): no 256-row pad waste.
    #  * large batch  -> TB a multiple of 256 (full MXU M tiles on v6e/v7x),
    #    chosen so there are >= 2 grid steps (both TensorCores on v7x).
    if B <= 512:
        TB = _round_up(B, 8)
    else:
        TB = max(256, min(block_b, _round_up(pl.cdiv(B, 2), 256)))
    Bp = _round_up(B, TB)
    G = Bp // TB

    # f32 inputs straight into the kernel; pad only when the batch is ragged.
    if Bp != B:
        state = jnp.pad(state, ((0, Bp - B), (0, 0)))
        action = jnp.pad(action, ((0, Bp - B), (0, 0)))

    def resident(arr):
        nd = arr.ndim
        return pl.BlockSpec(arr.shape, lambda i, _n=nd: (0,) * _n)

    out = pl.pallas_call(
        critic_kernel,
        out_shape=jax.ShapeDtypeStruct((1, Bp), jnp.float32),
        grid=(G,),
        in_specs=[
            pl.BlockSpec((TB, S), lambda i: (i, 0)),   # state tile (f32)
            pl.BlockSpec((TB, A), lambda i: (i, 0)),   # action tile (f32)
            resident(w1), resident(b1),
            resident(w2s), resident(w2a), resident(b2),
            resident(w3), resident(b3),
            resident(w4), resident(b4),
        ],
        out_specs=pl.BlockSpec((1, TB), lambda i: (0, i)),   # lane-dense row
        compiler_params=pltpu.CompilerParams(
            dimension_semantics=("parallel",)),
    )(state, action, w1, b1, w2s, w2a, b2, w3, b3, w4, b4)

    return out.reshape(Bp, 1)[:B]


def init_critic_params(key, state_size, action_size,
                       fcs1_units=256, fc2_units=256, fc3_units=128):
    """Deterministic init mirroring Critic.reset_parameters().

    PyTorch stores Linear weights as (out, in); matmul weights are stored
    transposed (in, out).  MXU weights (w1, w2s, w3) are bf16; the VPU-path
    weights (w2a action slice, w4 column) stay f32.
    hidden_init uses weight.size()[0] (= out_features) for the limit,
    reproduced here verbatim.
    """
    keys = jax.random.split(key, 8)

    def u(k, shape, lim):
        return jax.random.uniform(k, shape, jnp.float32, minval=-lim, maxval=lim)

    lim1 = float(fcs1_units) ** -0.5
    lim2 = float(fc2_units) ** -0.5
    lim3 = float(fc3_units) ** -0.5

    bf = jnp.bfloat16
    w1 = u(keys[0], (state_size, fcs1_units), lim1).astype(bf)
    b1 = u(keys[1], (1, fcs1_units), lim1)

    # fc2 bias uses lim2 (documented deviation from torch's 1/sqrt(fan_in)
    # default; synthetic weights, irrelevant to the forward-pass semantics).
    w2 = u(keys[2], (fcs1_units + action_size, fc2_units), lim2)
    b2 = u(keys[3], (1, fc2_units), lim2)
    w2s = w2[:fcs1_units, :].astype(bf)        # MXU path, bf16
    w2a = w2[fcs1_units:, :]                   # (A, fc2) f32, VPU FMA path

    w3 = u(keys[4], (fc2_units, fc3_units), lim3).astype(bf)
    b3 = u(keys[5], (1, fc3_units), lim3)

    w4 = u(keys[6], (fc3_units, 1), 3e-3)      # (fc3, 1) f32 column, VPU epilogue
    b4 = u(keys[7], (1, 1), 3e-3)

    return (w1, b1, w2s, w2a, b2, w3, b3, w4, b4)


def critic_reference(state, action, params):
    """Pure-JAX reference with the same bf16-MXU / f32-accumulate math."""
    w1, b1, w2s, w2a, b2, w3, b3, w4, b4 = params
    bf, f32 = jnp.bfloat16, jnp.float32
    xs = _leaky_relu(
        jnp.dot(state.astype(bf), w1, preferred_element_type=f32) + b1)
    x = (jnp.dot(xs.astype(bf), w2s, preferred_element_type=f32)
         + b2 + action @ w2a)
    x = _leaky_relu(x)
    x = _leaky_relu(
        jnp.dot(x.astype(bf), w3, preferred_element_type=f32) + b3)
    return x @ w4 + b4


if __name__ == "__main__":
    key = jax.random.PRNGKey(0)
    k_params, k_state, k_action = jax.random.split(key, 3)

    batch = 8
    state_size = 32
    action_size = 4

    params = init_critic_params(k_params, state_size, action_size)
    state = jax.random.normal(k_state, (batch, state_size), jnp.float32)
    action = jax.random.normal(k_action, (batch, action_size), jnp.float32)

    q = critic_forward(state, action, params)
    jax.block_until_ready(q)

    q_ref = critic_reference(state, action, params)
    assert q.shape == (batch, 1), q.shape
    assert jnp.allclose(q, q_ref, atol=2e-3, rtol=2e-3), "mismatch vs reference"

    print("KERNEL_OK")
</pallas_src>

<mosaic_0001>
module attributes {stable_mosaic.version = 11 : i64} {
  func.func @critic_kernel(%arg0: i32, %arg1: memref<8x32xf32, #tpu.memory_space<vmem>>, %arg2: memref<8x4xf32, #tpu.memory_space<vmem>>, %arg3: memref<32x256xbf16, #tpu.memory_space<vmem>>, %arg4: memref<1x256xf32, #tpu.memory_space<vmem>>, %arg5: memref<256x256xbf16, #tpu.memory_space<vmem>>, %arg6: memref<4x256xf32, #tpu.memory_space<vmem>>, %arg7: memref<1x256xf32, #tpu.memory_space<vmem>>, %arg8: memref<256x128xbf16, #tpu.memory_space<vmem>>, %arg9: memref<1x128xf32, #tpu.memory_space<vmem>>, %arg10: memref<128x1xf32, #tpu.memory_space<vmem>>, %arg11: memref<1x1xf32, #tpu.memory_space<vmem>>, %arg12: memref<1x8xf32, #tpu.memory_space<vmem>>) attributes {dimension_semantics = [#tpu.dimension_semantics<parallel>], iteration_bounds = array<i64: 1>, scalar_prefetch = 0 : i64, scratch_operands = 0 : i64, tpu.core_type = #tpu.core_type<tc>, window_params = [{transform_indices = @transform_0, window_bounds = array<i64: 8, 32>}, {transform_indices = @transform_1, window_bounds = array<i64: 8, 4>}, {pipeline_mode = #tpu.pipeline_mode<synchronous>, transform_indices = @transform_2, window_bounds = array<i64: 32, 256>}, {pipeline_mode = #tpu.pipeline_mode<synchronous>, transform_indices = @transform_3, window_bounds = array<i64: 1, 256>}, {pipeline_mode = #tpu.pipeline_mode<synchronous>, transform_indices = @transform_4, window_bounds = array<i64: 256, 256>}, {pipeline_mode = #tpu.pipeline_mode<synchronous>, transform_indices = @transform_5, window_bounds = array<i64: 4, 256>}, {pipeline_mode = #tpu.pipeline_mode<synchronous>, transform_indices = @transform_6, window_bounds = array<i64: 1, 256>}, {pipeline_mode = #tpu.pipeline_mode<synchronous>, transform_indices = @transform_7, window_bounds = array<i64: 256, 128>}, {pipeline_mode = #tpu.pipeline_mode<synchronous>, transform_indices = @transform_8, window_bounds = array<i64: 1, 128>}, {pipeline_mode = #tpu.pipeline_mode<synchronous>, transform_indices = @transform_9, window_bounds = array<i64: 128, 1>}, {pipeline_mode = #tpu.pipeline_mode<synchronous>, transform_indices = @transform_10, window_bounds = array<i64: 1, 1>}, {transform_indices = @transform_11, window_bounds = array<i64: 1, 8>}]} {
    %c0 = arith.constant 0 : index
    %c0_0 = arith.constant 0 : index
    %0 = vector.load %arg1[%c0, %c0_0] : memref<8x32xf32, #tpu.memory_space<vmem>>, vector<8x32xf32>
    %1 = arith.truncf %0 : vector<8x32xf32> to vector<8x32xbf16>
    %c0_1 = arith.constant 0 : index
    %c0_2 = arith.constant 0 : index
    %2 = vector.load %arg2[%c0_1, %c0_2] : memref<8x4xf32, #tpu.memory_space<vmem>>, vector<8x4xf32>
    %c0_3 = arith.constant 0 : index
    %c0_4 = arith.constant 0 : index
    %3 = vector.load %arg3[%c0_3, %c0_4] : memref<32x256xbf16, #tpu.memory_space<vmem>>, vector<32x256xbf16>
    %cst = arith.constant dense<0.000000e+00> : vector<8x256xf32>
    %4 = tpu.matmul %1, %3, %cst {dimension_numbers = #tpu.dot_dimension_numbers<[1], [0], [0], [1], [0, 0, 1, 1], [], []>} : vector<8x32xbf16>, vector<32x256xbf16>, vector<8x256xf32> -> vector<8x256xf32>
    %c0_5 = arith.constant 0 : index
    %c0_6 = arith.constant 0 : index
    %5 = vector.load %arg4[%c0_5, %c0_6] : memref<1x256xf32, #tpu.memory_space<vmem>>, vector<1x256xf32>
    %6 = vector.broadcast %5 : vector<1x256xf32> to vector<8x256xf32>
    %7 = arith.addf %4, %6 : vector<8x256xf32>
    %cst_7 = arith.constant 0.000000e+00 : f32
    %8 = vector.broadcast %cst_7 : f32 to vector<8x256xf32>
    %9 = arith.cmpf ogt, %7, %8 : vector<8x256xf32>
    %cst_8 = arith.constant 0.00999999977 : f32
    %10 = vector.broadcast %cst_8 : f32 to vector<8x256xf32>
    %11 = arith.mulf %10, %7 : vector<8x256xf32>
    %12 = arith.select %9, %7, %11 : vector<8x256xi1>, vector<8x256xf32>
    %13 = arith.truncf %12 : vector<8x256xf32> to vector<8x256xbf16>
    %c0_9 = arith.constant 0 : index
    %c0_10 = arith.constant 0 : index
    %14 = vector.load %arg5[%c0_9, %c0_10] : memref<256x256xbf16, #tpu.memory_space<vmem>>, vector<256x256xbf16>
    %cst_11 = arith.constant dense<0.000000e+00> : vector<8x256xf32>
    %15 = tpu.matmul %13, %14, %cst_11 {dimension_numbers = #tpu.dot_dimension_numbers<[1], [0], [0], [1], [0, 0, 1, 1], [], []>} : vector<8x256xbf16>, vector<256x256xbf16>, vector<8x256xf32> -> vector<8x256xf32>
    %c0_12 = arith.constant 0 : index
    %c0_13 = arith.constant 0 : index
    %16 = vector.load %arg7[%c0_12, %c0_13] : memref<1x256xf32, #tpu.memory_space<vmem>>, vector<1x256xf32>
    %17 = vector.broadcast %16 : vector<1x256xf32> to vector<8x256xf32>
    %18 = arith.addf %15, %17 : vector<8x256xf32>
    %19 = vector.extract_strided_slice %2 {offsets = [0, 0], sizes = [8, 1], strides = [1, 1]} : vector<8x4xf32> to vector<8x1xf32>
    %c0_14 = arith.constant 0 : index
    %c0_15 = arith.constant 0 : index
    %20 = vector.load %arg6[%c0_14, %c0_15] : memref<4x256xf32, #tpu.memory_space<vmem>>, vector<1x256xf32>
    %21 = vector.broadcast %19 : vector<8x1xf32> to vector<8x256xf32>
    %22 = vector.broadcast %20 : vector<1x256xf32> to vector<8x256xf32>
    %23 = arith.mulf %21, %22 : vector<8x256xf32>
    %24 = arith.addf %18, %23 : vector<8x256xf32>
    %25 = vector.extract_strided_slice %2 {offsets = [0, 1], sizes = [8, 1], strides = [1, 1]} : vector<8x4xf32> to vector<8x1xf32>
    %c1 = arith.constant 1 : index
    %c0_16 = arith.constant 0 : index
    %26 = vector.load %arg6[%c1, %c0_16] : memref<4x256xf32, #tpu.memory_space<vmem>>, vector<1x256xf32>
    %27 = vector.broadcast %25 : vector<8x1xf32> to vector<8x256xf32>
    %28 = vector.broadcast %26 : vector<1x256xf32> to vector<8x256xf32>
    %29 = arith.mulf %27, %28 : vector<8x256xf32>
    %30 = arith.addf %24, %29 : vector<8x256xf32>
    %31 = vector.extract_strided_slice %2 {offsets = [0, 2], sizes = [8, 1], strides = [1, 1]} : vector<8x4xf32> to vector<8x1xf32>
    %c2 = arith.constant 2 : index
    %c0_17 = arith.constant 0 : index
    %32 = vector.load %arg6[%c2, %c0_17] : memref<4x256xf32, #tpu.memory_space<vmem>>, vector<1x256xf32>
    %33 = vector.broadcast %31 : vector<8x1xf32> to vector<8x256xf32>
    %34 = vector.broadcast %32 : vector<1x256xf32> to vector<8x256xf32>
    %35 = arith.mulf %33, %34 : vector<8x256xf32>
    %36 = arith.addf %30, %35 : vector<8x256xf32>
    %37 = vector.extract_strided_slice %2 {offsets = [0, 3], sizes = [8, 1], strides = [1, 1]} : vector<8x4xf32> to vector<8x1xf32>
    %c3 = arith.constant 3 : index
    %c0_18 = arith.constant 0 : index
    %38 = vector.load %arg6[%c3, %c0_18] : memref<4x256xf32, #tpu.memory_space<vmem>>, vector<1x256xf32>
    %39 = vector.broadcast %37 : vector<8x1xf32> to vector<8x256xf32>
    %40 = vector.broadcast %38 : vector<1x256xf32> to vector<8x256xf32>
    %41 = arith.mulf %39, %40 : vector<8x256xf32>
    %42 = arith.addf %36, %41 : vector<8x256xf32>
    %cst_19 = arith.constant 0.000000e+00 : f32
    %43 = vector.broadcast %cst_19 : f32 to vector<8x256xf32>
    %44 = arith.cmpf ogt, %42, %43 : vector<8x256xf32>
    %cst_20 = arith.constant 0.00999999977 : f32
    %45 = vector.broadcast %cst_20 : f32 to vector<8x256xf32>
    %46 = arith.mulf %45, %42 : vector<8x256xf32>
    %47 = arith.select %44, %42, %46 : vector<8x256xi1>, vector<8x256xf32>
    %48 = arith.truncf %47 : vector<8x256xf32> to vector<8x256xbf16>
    %c0_21 = arith.constant 0 : index
    %c0_22 = arith.constant 0 : index
    %49 = vector.load %arg8[%c0_21, %c0_22] : memref<256x128xbf16, #tpu.memory_space<vmem>>, vector<256x128xbf16>
    %cst_23 = arith.constant dense<0.000000e+00> : vector<8x128xf32>
    %50 = tpu.matmul %48, %49, %cst_23 {dimension_numbers = #tpu.dot_dimension_numbers<[1], [0], [0], [1], [0, 0, 1, 1], [], []>} : vector<8x256xbf16>, vector<256x128xbf16>, vector<8x128xf32> -> vector<8x128xf32>
    %c0_24 = arith.constant 0 : index
    %c0_25 = arith.constant 0 : index
    %51 = vector.load %arg9[%c0_24, %c0_25] : memref<1x128xf32, #tpu.memory_space<vmem>>, vector<1x128xf32>
    %52 = vector.broadcast %51 : vector<1x128xf32> to vector<8x128xf32>
    %53 = arith.addf %50, %52 : vector<8x128xf32>
    %cst_26 = arith.constant 0.000000e+00 : f32
    %54 = vector.broadcast %cst_26 : f32 to vector<8x128xf32>
    %55 = arith.cmpf ogt, %53, %54 : vector<8x128xf32>
    %cst_27 = arith.constant 0.00999999977 : f32
    %56 = vector.broadcast %cst_27 : f32 to vector<8x128xf32>
    %57 = arith.mulf %56, %53 : vector<8x128xf32>
    %58 = arith.select %55, %53, %57 : vector<8x128xi1>, vector<8x128xf32>
    %59 = tpu.transpose %58, [1, 0] : vector<8x128xf32> -> vector<128x8xf32>
    %c0_28 = arith.constant 0 : index
    %c0_29 = arith.constant 0 : index
    %60 = vector.load %arg10[%c0_28, %c0_29] : memref<128x1xf32, #tpu.memory_space<vmem>>, vector<128x1xf32>
    %61 = vector.broadcast %60 : vector<128x1xf32> to vector<128x8xf32>
    %62 = arith.mulf %59, %61 : vector<128x8xf32>
    %cst_30 = arith.constant dense<0.000000e+00> : vector<8xf32>
    %63 = vector.multi_reduction <add>, %62, %cst_30 [0] : vector<128x8xf32> to vector<8xf32>
    %64 = vector.shape_cast %63 : vector<8xf32> to vector<1x8xf32>
    %c0_31 = arith.constant 0 : index
    %c0_32 = arith.constant 0 : index
    %65 = vector.load %arg11[%c0_31, %c0_32] : memref<1x1xf32, #tpu.memory_space<vmem>>, vector<1x1xf32>
    %66 = vector.broadcast %65 : vector<1x1xf32> to vector<1x8xf32>
    %67 = arith.addf %64, %66 : vector<1x8xf32>
    %c0_33 = arith.constant 0 : index
    %c0_34 = arith.constant 0 : index
    %68 = vector.load %arg12[%c0_33, %c0_34] : memref<1x8xf32, #tpu.memory_space<vmem>>, vector<1x8xf32>
    tpu.vector_store %arg12[%c0_33, %c0_34], %67 {strides = array<i32>} : memref<1x8xf32, #tpu.memory_space<vmem>>, vector<1x8xf32>,
    return
  }
  func.func @transform_0(%arg0: i32) -> (i32, i32) {
    %c0_i32 = arith.constant 0 : i32
    %c0_i32_0 = arith.constant 0 : i32
    return %arg0, %c0_i32 : i32, i32
  }
  func.func @transform_1(%arg0: i32) -> (i32, i32) {
    %c0_i32 = arith.constant 0 : i32
    %c0_i32_0 = arith.constant 0 : i32
    return %arg0, %c0_i32 : i32, i32
  }
  func.func @transform_2(%arg0: i32) -> (i32, i32) {
    %c0_i32 = arith.constant 0 : i32
    %c0_i32_0 = arith.constant 0 : i32
    %c0_i32_1 = arith.constant 0 : i32
    return %c0_i32, %c0_i32_0 : i32, i32
  }
  func.func @transform_3(%arg0: i32) -> (i32, i32) {
    %c0_i32 = arith.constant 0 : i32
    %c0_i32_0 = arith.constant 0 : i32
    %c0_i32_1 = arith.constant 0 : i32
    return %c0_i32, %c0_i32_0 : i32, i32
  }
  func.func @transform_4(%arg0: i32) -> (i32, i32) {
    %c0_i32 = arith.constant 0 : i32
    %c0_i32_0 = arith.constant 0 : i32
    %c0_i32_1 = arith.constant 0 : i32
    return %c0_i32, %c0_i32_0 : i32, i32
  }
  func.func @transform_5(%arg0: i32) -> (i32, i32) {
    %c0_i32 = arith.constant 0 : i32
    %c0_i32_0 = arith.constant 0 : i32
    %c0_i32_1 = arith.constant 0 : i32
    return %c0_i32, %c0_i32_0 : i32, i32
  }
  func.func @transform_6(%arg0: i32) -> (i32, i32) {
    %c0_i32 = arith.constant 0 : i32
    %c0_i32_0 = arith.constant 0 : i32
    %c0_i32_1 = arith.constant 0 : i32
    return %c0_i32, %c0_i32_0 : i32, i32
  }
  func.func @transform_7(%arg0: i32) -> (i32, i32) {
    %c0_i32 = arith.constant 0 : i32
    %c0_i32_0 = arith.constant 0 : i32
    %c0_i32_1 = arith.constant 0 : i32
    return %c0_i32, %c0_i32_0 : i32, i32
  }
  func.func @transform_8(%arg0: i32) -> (i32, i32) {
    %c0_i32 = arith.constant 0 : i32
    %c0_i32_0 = arith.constant 0 : i32
    %c0_i32_1 = arith.constant 0 : i32
    return %c0_i32, %c0_i32_0 : i32, i32
  }
  func.func @transform_9(%arg0: i32) -> (i32, i32) {
    %c0_i32 = arith.constant 0 : i32
    %c0_i32_0 = arith.constant 0 : i32
    %c0_i32_1 = arith.constant 0 : i32
    return %c0_i32, %c0_i32_0 : i32, i32
  }
  func.func @transform_10(%arg0: i32) -> (i32, i32) {
    %c0_i32 = arith.constant 0 : i32
    %c0_i32_0 = arith.constant 0 : i32
    %c0_i32_1 = arith.constant 0 : i32
    return %c0_i32, %c0_i32_0 : i32, i32
  }
  func.func @transform_11(%arg0: i32) -> (i32, i32) {
    %c0_i32 = arith.constant 0 : i32
    %c0_i32_0 = arith.constant 0 : i32
    return %c0_i32, %arg0 : i32, i32
  }
}

</mosaic_0001>

<bundles_post_ra>
// kernel: critic_forward.1
= control target key start
LH: loop header
LB: loop body
LE: loop exit
PB: predicated region body
PF: predicated region fallthrough
CT: control target
= control target key end

     0   :  { %s1460_s0 = inlined_call_operand.vmem [shape: f32[8,32], index: 0, kind: input, shape index: {}]   ;;  %s1461_s1 = inlined_call_operand.vmem [shape: f32[8,4], index: 1, kind: input, shape index: {}]   ;;  %s1462_s2 = inlined_call_operand.hbm [shape: bf16[32,256], index: 2, kind: input, shape index: {}]   ;;  %s1463_s3 = inlined_call_operand.hbm [shape: f32[1,256], index: 3, kind: input, shape index: {}]   ;;  %s1464_s4 = inlined_call_operand.hbm [shape: bf16[256,256], index: 4, kind: input, shape index: {}]   ;;  %s1465_s5 = inlined_call_operand.vmem [shape: f32[4,256], index: 5, kind: input, shape index: {}]   ;;  %s1466_s6 = inlined_call_operand.vmem [shape: f32[1,256], index: 6, kind: input, shape index: {}]   ;;  %s1467_s7 = inlined_call_operand.vmem [shape: bf16[256,128], index: 7, kind: input, shape index: {}]   ;;  %s1468_s8 = inlined_call_operand.vmem [shape: f32[1,128], index: 8, kind: input, shape index: {}]   ;;  %s1469_s9 = inlined_call_operand.vmem [shape: f32[128,1], index: 9, kind: input, shape index: {}]   ;;  %s1470_s10 = inlined_call_operand.<no memory space> [shape: f32[1,1], index: 10, kind: input, shape index: {}]   ;;  %s1471_s11 = inlined_call_operand.hbm [shape: f32[1,8], index: 11, kind: output, shape index: {}]  }
   0x1   :  { %v16_v0 = vstv %s1470_s10 }
   0x2   :  { %17 = vst [vmem:[#allocation2] sm:$0x1] %v16_v0 }
   0x3   :  { %18 = vsyncpa [#allocation4], 0 }
   0x4   :  { %19 = vsyncpa [#allocation7], 0  ;;  %s43_s21 = sshll.u32 %s1463_s3, 4  ;;  %s44_s21 = int_to_ptr.hbm [resolvable:$true] %s43_s21 }
   0x5   :  { %20 = vsyncpa [#allocation5], 0  ;;  %s1233_s22 = smov [#allocation6]   ;;  %s29_s26 = sshll.u32 %s1462_s2, 4  ;;  %s30_s26 = int_to_ptr.hbm [resolvable:$true] %s29_s26 }
   0x6   :  { %s45_s23 = sshll.u32 %s1233_s22, 4  ;;  %s1234_s27 = smov [#allocation3]   ;;  %s46_s23 = int_to_ptr.vmem [resolvable:$true] %s45_s23 }
   0x7   :  { %48 = dma.hbm_to_vmem [thread:$0]  %s44_s21, 32, %s46_s23, [#allocation7]  }
   0x8   :  { %s31_s10 = sshll.u32 %s1234_s27, 4  ;;  %s1235_s28 = smov 128   ;;  %s32_s10 = int_to_ptr.vmem [resolvable:$true] %s31_s10 }
   0x9   :  { %s1236_s29 = smov 8   ;;  %s53_s3 = sshll.u32 %s1464_s4, 4  ;;  %s54_s3 = int_to_ptr.hbm [resolvable:$true] %s53_s3 }
   0xa   :  { %37 = dma.hbm_to_vmem [thread:$0]  %s30_s26, 512, %s32_s10, [#allocation4], %s1235_s28, %s1235_s28, %s1236_s29  }
   0xb   :  { %s1237_s13 = smov [#allocation8]  }
   0xc   :  { %s55_s14 = sshll.u32 %s1237_s13, 4  ;;  %s56_s14 = int_to_ptr.vmem [resolvable:$true] %s55_s14 }
   0xd   :  { %61 = dma.hbm_to_vmem [thread:$0]  %s54_s3, 4096, %s56_s14, [#allocation7], %s1235_s28, %s1235_s28, %s1236_s29  }
   0xe   :  { %1227 = dma.done.wait [#allocation4], 512  }
   0xf   :  { %1228 = vsyncadd [#allocation4], 4294966784 }
  0x10   :  { %1229 = dma.done.wait [#allocation7], 4128  }
  0x11   :  { %1230 = vsyncadd [#allocation7], 4294963168  ;;  %v857_v1 = vld [vmem:[#allocation3 + $0x10] sm:$0xf]  ;;  %v1063_v2 = vld [vmem:[#allocation3 + $0x14] sm:$0xf0] }
  0x12   :  { %v1062_v3 = vld [vmem:[#allocation3 + $0x14] sm:$0xf]  ;;  %v858_v4 = vor.u32 %v1063_v2, %v857_v1  ;;  %v859_v5 = vld [vmem:[#allocation3 + $0x18] sm:$0xf0]  ;;  %v849_v6 = vld [vmem:[#allocation3] sm:$0xf] }
  0x13   :  { %v1061_v7 = vld [vmem:[#allocation3 + $0x4] sm:$0xf0]  ;;  %v862_v8 = vor.u32 %v1062_v3, %v859_v5  ;;  %v1060_v9 = vld [vmem:[#allocation3 + $0x4] sm:$0xf]  ;;  %v851_v10 = vld [vmem:[#allocation3 + $0x8] sm:$0xf0] }
  0x14   :  { %v87_v11 = vld [vmem:[%s1460_s0] sm:$0xff]  ;;  %vm120_vm0 = vcmask 261120   ;;  %130 = vmatpush.bf16.msra.mxu0 %v858_v4  ;;  %v850_v12 = vor.u32 %v1061_v7, %v849_v6  ;;  %v923_v13 = vld [vmem:[#allocation8 + $0x70] sm:$0xf]  ;;  %v1079_v14 = vld [vmem:[#allocation8 + $0x74] sm:$0xf0]  ;;  %v854_v16 = vor.u32 %v1060_v9, %v851_v10 }
  0x15   :  { %v987_v15 = vld [vmem:[#allocation8 + $0xf0] sm:$0xf]  ;;  %143 = vmatpush.bf16.msra.mxu1 %v862_v8  ;;  %v924_v17 = vor.u32 %v1079_v14, %v923_v13  ;;  %v1095_v18 = vld [vmem:[#allocation8 + $0xf4] sm:$0xf0]  ;;  %v1078_v19 = vld [vmem:[#allocation8 + $0x74] sm:$0xf]  ;;  %v88_v26 = vpack.c.bf16 %v87_v11, %v87_v11 }
  0x16   :  { %v925_v20 = vld [vmem:[#allocation8 + $0x78] sm:$0xf0]  ;;  %v988_v21 = vor.u32 %v1095_v18, %v987_v15  ;;  %v1094_v23 = vld [vmem:[#allocation8 + $0xf4] sm:$0xf]  ;;  %v915_v25 = vld [vmem:[#allocation8 + $0x60] sm:$0xf] }
  0x17   :  { %v928_v22 = vor.u32 %v1078_v19, %v925_v20  ;;  %v989_v24 = vld [vmem:[#allocation8 + $0xf8] sm:$0xf0]  ;;  %356 = vmatpush.bf16.msra.mxu2 %v924_v17  ;;  %v1077_v28 = vld [vmem:[#allocation8 + $0x64] sm:$0xf0]  ;;  %v979_v29 = vld [vmem:[#allocation8 + $0xe0] sm:$0xf] }
  0x18   :  { %v992_v27 = vor.u32 %v1094_v23, %v989_v24  ;;  %v1093_v30 = vld [vmem:[#allocation8 + $0xe4] sm:$0xf0]  ;;  %131 = vmatpush.bf16.msra.mxu0 %v850_v12  ;;  %369 = vmatpush.bf16.msra.mxu3 %v988_v21  ;;  %v916_v31 = vor.u32 %v1077_v28, %v915_v25  ;;  %v1076_v33 = vld [vmem:[#allocation8 + $0x64] sm:$0xf]  ;;  %v917_v34 = vld [vmem:[#allocation8 + $0x68] sm:$0xf0] }
  0x19   :  { %v980_v32 = vor.u32 %v1093_v30, %v979_v29  ;;  %v1092_v35 = vld [vmem:[#allocation8 + $0xe4] sm:$0xf]  ;;  %144 = vmatpush.bf16.msra.mxu1 %v854_v16  ;;  %v920_v36 = vor.u32 %v1076_v33, %v917_v34  ;;  %v981_v37 = vld [vmem:[#allocation8 + $0xe8] sm:$0xf0]  ;;  %v907_v38 = vld [vmem:[#allocation8 + $0x50] sm:$0xf] }
  0x1a   :  { %v1075_v39 = vld [vmem:[#allocation8 + $0x54] sm:$0xf0]  ;;  %v984_v40 = vor.u32 %v1092_v35, %v981_v37  ;;  %v971_v41 = vld [vmem:[#allocation8 + $0xd0] sm:$0xf]  ;;  %v1074_v43 = vld [vmem:[#allocation8 + $0x54] sm:$0xf] }
  0x1b   :  { %v1091_v42 = vld [vmem:[#allocation8 + $0xd4] sm:$0xf0]  ;;  %863 = vmatmul.msk.bf16.vlgmr.msra.gmra.mxu0 %vm120_vm0, %v88_v26  ;;  %357 = vmatpush.bf16.msra.mxu2 %v916_v31  ;;  %v908_v44 = vor.u32 %v1075_v39, %v907_v38  ;;  %v909_v45 = vld [vmem:[#allocation8 + $0x58] sm:$0xf0]  ;;  %v1090_v46 = vld [vmem:[#allocation8 + $0xd4] sm:$0xf] }
  0x1c   :  { %382 = vmatpush.bf16.msrb.mxu0 %v928_v22  ;;  %v973_v47 = vld [vmem:[#allocation8 + $0xd8] sm:$0xf0]  ;;  %864 = vmatmul.msk.bf16.vlgmr.msra.gmra.mxu1 %vm120_vm0, %v88_v26  ;;  %v972_v48 = vor.u32 %v1091_v42, %v971_v41  ;;  %v899_v49 = vld [vmem:[#allocation8 + $0x40] sm:$0xf]  ;;  %v1073_v50 = vld [vmem:[#allocation8 + $0x44] sm:$0xf0]  ;;  %v912_v51 = vor.u32 %v1074_v43, %v909_v45 }
  0x1d   :  { %395 = vmatpush.bf16.msrb.mxu1 %v992_v27  ;;  %370 = vmatpush.bf16.msra.mxu3 %v980_v32  ;;  %v963_v52 = vld [vmem:[#allocation8 + $0xc0] sm:$0xf]  ;;  %v1089_v53 = vld [vmem:[#allocation8 + $0xc4] sm:$0xf0]  ;;  %v976_v54 = vor.u32 %v1090_v46, %v973_v47  ;;  %v1072_v55 = vld [vmem:[#allocation8 + $0x44] sm:$0xf]  ;;  %v900_v57 = vor.u32 %v1073_v50, %v899_v49 }
  0x1e   :  { %v901_v56 = vld [vmem:[#allocation8 + $0x48] sm:$0xf0]  ;;  %v1088_v58 = vld [vmem:[#allocation8 + $0xc4] sm:$0xf]  ;;  %v964_v60 = vor.u32 %v1089_v53, %v963_v52  ;;  %v891_v61 = vld [vmem:[#allocation8 + $0x30] sm:$0xf] }
  0x1f   :  { %358 = vmatpush.bf16.msra.mxu2 %v908_v44  ;;  %v965_v59 = vld [vmem:[#allocation8 + $0xc8] sm:$0xf0]  ;;  %v1071_v62 = vld [vmem:[#allocation8 + $0x34] sm:$0xf0]  ;;  %v904_v63 = vor.u32 %v1072_v55, %v901_v56  ;;  %v955_v0 = vld [vmem:[#allocation8 + $0xb0] sm:$0xf] }
  0x20   :  { %383 = vmatpush.bf16.msrb.mxu0 %v920_v36  ;;  %v1087_v1 = vld [vmem:[#allocation8 + $0xb4] sm:$0xf0]  ;;  %v968_v2 = vor.u32 %v1088_v58, %v965_v59  ;;  %v1070_v3 = vld [vmem:[#allocation8 + $0x34] sm:$0xf]  ;;  %v893_v4 = vld [vmem:[#allocation8 + $0x38] sm:$0xf0]  ;;  %v892_v5 = vor.u32 %v1071_v62, %v891_v61 }
  0x21   :  { %396 = vmatpush.bf16.msrb.mxu1 %v984_v40  ;;  %371 = vmatpush.bf16.msra.mxu3 %v972_v48  ;;  %v1086_v6 = vld [vmem:[#allocation8 + $0xb4] sm:$0xf]  ;;  %v957_v7 = vld [vmem:[#allocation8 + $0xb8] sm:$0xf0]  ;;  %v956_v8 = vor.u32 %v1087_v1, %v955_v0  ;;  %v883_v9 = vld [vmem:[#allocation8 + $0x20] sm:$0xf]  ;;  %v896_v11 = vor.u32 %v1070_v3, %v893_v4 }
  0x22   :  { %v1069_v10 = vld [vmem:[#allocation8 + $0x24] sm:$0xf0]  ;;  %v947_v12 = vld [vmem:[#allocation8 + $0xa0] sm:$0xf]  ;;  %v960_v14 = vor.u32 %v1086_v6, %v957_v7  ;;  %v1068_v15 = vld [vmem:[#allocation8 + $0x24] sm:$0xf] }
  0x23   :  { %359 = vmatpush.bf16.msra.mxu2 %v900_v57  ;;  %v1085_v13 = vld [vmem:[#allocation8 + $0xa4] sm:$0xf0]  ;;  %v885_v16 = vld [vmem:[#allocation8 + $0x28] sm:$0xf0]  ;;  %v884_v17 = vor.u32 %v1069_v10, %v883_v9  ;;  %v1084_v18 = vld [vmem:[#allocation8 + $0xa4] sm:$0xf] }
  0x24   :  { %384 = vmatpush.bf16.msrb.mxu0 %v912_v51  ;;  %v949_v19 = vld [vmem:[#allocation8 + $0xa8] sm:$0xf0]  ;;  %v948_v20 = vor.u32 %v1085_v13, %v947_v12  ;;  %v888_v21 = vor.u32 %v1068_v15, %v885_v16  ;;  %v875_v23 = vld [vmem:[#allocation8 + $0x10] sm:$0xf]  ;;  %v1067_v24 = vld [vmem:[#allocation8 + $0x14] sm:$0xf0] }
  0x25   :  { %397 = vmatpush.bf16.msrb.mxu1 %v976_v54  ;;  %372 = vmatpush.bf16.msra.mxu3 %v964_v60  ;;  %v952_v22 = vor.u32 %v1084_v18, %v949_v19  ;;  %v939_v25 = vld [vmem:[#allocation8 + $0x90] sm:$0xf]  ;;  %v876_v26 = vor.u32 %v1067_v24, %v875_v23  ;;  %v1083_v27 = vld [vmem:[#allocation8 + $0x94] sm:$0xf0]  ;;  %v1066_v28 = vld [vmem:[#allocation8 + $0x14] sm:$0xf] }
  0x26   :  { %v940_v29 = vor.u32 %v1083_v27, %v939_v25  ;;  %v877_v30 = vld [vmem:[#allocation8 + $0x18] sm:$0xf0]  ;;  %v1082_v31 = vld [vmem:[#allocation8 + $0x94] sm:$0xf]  ;;  %v867_v35 = vld [vmem:[#allocation8] sm:$0xf] }
  0x27   :  { %360 = vmatpush.bf16.msra.mxu2 %v892_v5  ;;  %v941_v32 = vld [vmem:[#allocation8 + $0x98] sm:$0xf0]  ;;  %v880_v33 = vor.u32 %v1066_v28, %v877_v30  ;;  %v1065_v36 = vld [vmem:[#allocation8 + $0x4] sm:$0xf0]  ;;  %v931_v37 = vld [vmem:[#allocation8 + $0x80] sm:$0xf] }
  0x28   :  { %385 = vmatpush.bf16.msrb.mxu0 %v904_v63  ;;  %v944_v34 = vor.u32 %v1082_v31, %v941_v32  ;;  %v868_v38 = vor.u32 %v1065_v36, %v867_v35  ;;  %v1081_v39 = vld [vmem:[#allocation8 + $0x84] sm:$0xf0]  ;;  %v1064_v40 = vld [vmem:[#allocation8 + $0x4] sm:$0xf]  ;;  %v869_v41 = vld [vmem:[#allocation8 + $0x8] sm:$0xf0] }
  0x29   :  { %398 = vmatpush.bf16.msrb.mxu1 %v968_v2  ;;  %373 = vmatpush.bf16.msra.mxu3 %v956_v8  ;;  %v932_v42 = vor.u32 %v1081_v39, %v931_v37  ;;  %v872_v43 = vor.u32 %v1064_v40, %v869_v41  ;;  %v1080_v44 = vld [vmem:[#allocation8 + $0x84] sm:$0xf]  ;;  %v933_v45 = vld [vmem:[#allocation8 + $0x88] sm:$0xf0]  ;;  %v1111_v48 = vld [vmem:[%s1467_s7 + $0x78] sm:$0xff]  ;;  %v1238_v49 = vmov 0  }
  0x2a   :  { %v936_v46 = vor.u32 %v1080_v44, %v933_v45  ;;  %v89_v47 = vld [vmem:[%s1461_s1] sm:$0xff]  ;;  %1123 = vset.pattern.permute.xlu0 %v1238_v49  ;;  %v1239_v50 = vmov 2   ;;  %v1103_v51 = vld [vmem:[%s1467_s7 + $0x38] sm:$0xff]  ;;  %v1110_v52 = vld [vmem:[%s1467_s7 + $0x70] sm:$0xff]  ;;  %v1240_v54 = vmov 1   ;;  %v1241_v55 = vmov 3  }
  0x2b   :  { %361 = vmatpush.bf16.msra.mxu2 %v884_v17  ;;  %1125 = vset.pattern.permute.xlu1 %v1239_v50  ;;  %v1109_v53 = vld [vmem:[%s1467_s7 + $0x68] sm:$0xff]  ;;  %v94_v56 = vld [vmem:[#allocation6] sm:$0x3]  ;;  %v1102_v7 = vld [vmem:[%s1467_s7 + $0x30] sm:$0xff]  ;;  %vm781_vm6 = vcmask 64512   ;;  %s836_s4 = sshll.u32 %s1471_s11, 4  ;;  %s837_s4 = int_to_ptr.hbm [resolvable:$true] %s836_s4 }
  0x2c   :  { %386 = vmatpush.bf16.msrb.mxu0 %v896_v11  ;;  %411 = vperm.xlu0 %1123, %v89_v47   ;;  %v96_v57 = vperm.slane %v94_v56, 0  ;;  %v97_v58 = vperm.slane %v94_v56, 1  ;;  %v1108_v8 = vld [vmem:[%s1467_s7 + $0x60] sm:$0xff]  ;;  %v1101_v9 = vld [vmem:[%s1467_s7 + $0x28] sm:$0xff]  ;;  %v1107_v10 = vld [vmem:[%s1467_s7 + $0x58] sm:$0xff]  ;;  %vm827_vm7 = vcmask 57344  }
  0x2d   :  { %399 = vmatpush.bf16.msrb.mxu1 %v960_v14  ;;  %374 = vmatpush.bf16.msra.mxu3 %v948_v20  ;;  %v1100_v11 = vld [vmem:[%s1467_s7 + $0x20] sm:$0xff]  ;;  %v1106_v12 = vld [vmem:[%s1467_s7 + $0x50] sm:$0xff]  ;;  %v1099_v13 = vld [vmem:[%s1467_s7 + $0x18] sm:$0xff] }
  0x2e   :  { %441 = vperm.xlu1 %1125, %v89_v47   ;;  %v1105_v14 = vld [vmem:[%s1467_s7 + $0x48] sm:$0xff]  ;;  %v1098_v15 = vld [vmem:[%s1467_s7 + $0x10] sm:$0xff]  ;;  %v1104_v16 = vld [vmem:[%s1467_s7 + $0x40] sm:$0xff] }
  0x2f   :  { %362 = vmatpush.bf16.msra.mxu2 %v876_v26  ;;  %v1097_v17 = vld [vmem:[%s1467_s7 + $0x8] sm:$0xff]  ;;  %v1096_v18 = vld [vmem:[%s1467_s7] sm:$0xff] }
  0x30   :  { %387 = vmatpush.bf16.msrb.mxu0 %v888_v21  ;;  %v408_v20 = vld [vmem:[%s1465_s5] ss:$4 sm:$0x3]  ;;  %v993_v23 = vld [vmem:[%s1465_s5 + $0x1] ss:$4 sm:$0x3] }
  0x31   :  { %400 = vmatpush.bf16.msrb.mxu1 %v952_v22  ;;  %375 = vmatpush.bf16.msra.mxu3 %v940_v29  ;;  %v190_v22 = vld [vmem:[%s1466_s6] sm:$0x3]  ;;  %v416_v24 = vperm.slane %v408_v20, 1  ;;  %v994_v26 = vld [vmem:[%s1465_s5 + $0x2] ss:$4 sm:$0x3] }
  0x32   :  { %v193_v25 = vperm.slane %v190_v22, 1  ;;  %v431_v27 = vperm.slane %v993_v23, 1  ;;  %v995_v30 = vld [vmem:[%s1465_s5 + $0x3] ss:$4 sm:$0x3]  ;;  %v446_v32 = vperm.slane %v994_v26, 1 }
  0x33   :  { %363 = vmatpush.bf16.msra.mxu2 %v868_v38  ;;  %v192_v37 = vperm.slane %v190_v22, 0  ;;  %v461_v38 = vperm.slane %v995_v30, 1  ;;  %v415_v39 = vperm.slane %v408_v20, 0 }
  0x34   :  { %388 = vmatpush.bf16.msrb.mxu0 %v880_v33  ;;  %1124 = vset.pattern.permute.xlu0 %v1240_v54 }
  0x35   :  { %401 = vmatpush.bf16.msrb.mxu1 %v944_v34  ;;  %376 = vmatpush.bf16.msra.mxu3 %v932_v42 }
  0x36   :  { %1126 = vset.pattern.permute.xlu1 %v1241_v55  ;;  %426 = vperm.xlu0 %1124, %v89_v47   ;;  %v460_v55 = vperm.slane %v995_v30, 0  ;;  %v681_v30 = vld [vmem:[%s1469_s9 + $0x60] sm:$0xff] }
  0x37   :  { %608 = vmatpush.bf16.msrb.mxu2 %v1103_v51  ;;  %456 = vperm.xlu1 %1126, %v89_v47   ;;  %v445_v51 = vperm.slane %v994_v26, 0 }
  0x38   :  { %389 = vmatpush.bf16.msrb.mxu0 %v872_v43  ;;  %v430_v43 = vperm.slane %v993_v23, 0 }
  0x39   :  { %402 = vmatpush.bf16.msrb.mxu1 %v936_v46  ;;  %621 = vmatpush.bf16.msrb.mxu3 %v1111_v48 }
  0x3b   :  { %609 = vmatpush.bf16.msrb.mxu2 %v1102_v7 }
  0x3d   :  { %622 = vmatpush.bf16.msrb.mxu3 %v1110_v52 }
  0x3e   :  { %1129 = vset.pattern.permute.xlu0 %v1238_v49 }
  0x3f   :  { %1128 = vset.pattern.permute.xlu1 %v1238_v49  ;;  %610 = vmatpush.bf16.msrb.mxu2 %v1101_v9  ;;  %v670_v9 = vld [vmem:[%s1469_s9 + $0x8] sm:$0xff] }
  0x40   :  { %692 = vperm.xlu1 %1128, %v670_v9  }
  0x41   :  { %623 = vmatpush.bf16.msrb.mxu3 %v1109_v53 }
  0x43   :  { %611 = vmatpush.bf16.msrb.mxu2 %v1100_v11  ;;  %v672_v11 = vld [vmem:[%s1469_s9 + $0x18] sm:$0xff] }
  0x45   :  { %624 = vmatpush.bf16.msrb.mxu3 %v1108_v8 }
  0x47   :  { %612 = vmatpush.bf16.msrb.mxu2 %v1099_v13  ;;  %v673_v13 = vld [vmem:[%s1469_s9 + $0x20] sm:$0xff] }
  0x48   :  { %702 = vperm.xlu1 %1128, %v672_v11  }
  0x49   :  { %625 = vmatpush.bf16.msrb.mxu3 %v1107_v10  ;;  %v671_v10 = vld [vmem:[%s1469_s9 + $0x10] sm:$0xff] }
  0x4a   :  { %697 = vperm.xlu0 %1129, %v671_v10  }
  0x4b   :  { %613 = vmatpush.bf16.msrb.mxu2 %v1098_v15 }
  0x4d   :  { %626 = vmatpush.bf16.msrb.mxu3 %v1106_v12  ;;  %v674_v12 = vld [vmem:[%s1469_s9 + $0x28] sm:$0xff] }
  0x4f   :  { %614 = vmatpush.bf16.msrb.mxu2 %v1097_v17  ;;  %v675_v17 = vld [vmem:[%s1469_s9 + $0x30] sm:$0xff] }
  0x50   :  { %707 = vperm.xlu1 %1128, %v673_v13  }
  0x51   :  { %627 = vmatpush.bf16.msrb.mxu3 %v1105_v14  ;;  %v676_v14 = vld [vmem:[%s1469_s9 + $0x38] sm:$0xff] }
  0x52   :  { %712 = vperm.xlu0 %1129, %v674_v12  }
  0x53   :  { %615 = vmatpush.bf16.msrb.mxu2 %v1096_v18  ;;  %v678_v18 = vld [vmem:[%s1469_s9 + $0x48] sm:$0xff] }
  0x55   :  { %628 = vmatpush.bf16.msrb.mxu3 %v1104_v16  ;;  %v1130_v16 = vld [vmem:[%s1468_s8] ss:$0 sm:$0xff] }
  0x58   :  { %717 = vperm.xlu1 %1128, %v675_v17  }
  0x5a   :  { %722 = vperm.xlu0 %1129, %v676_v14  }
  0x62   :  { %732 = vperm.xlu0 %1129, %v678_v18  }
  0x98   :  { %v133_v59 = vpop.f32.mrf.mxu0 }
  0x99   :  { %v134_v60 = vadd.f32 %v133_v59, %v96_v57  ;;  %v146_v61 = vpop.f32.mrf.mxu1 }
  0x9a   :  { %v147_v62 = vadd.f32 %v146_v61, %v97_v58 }
  0x9b   :  { %v152_v63 = vmul.f32 0.01, %v134_v60  ;;  %vm150_vm1 = vcmp.gt.f32.partialorder %v134_v60, 0.0 }
  0x9c   :  { %v153_v0 = vmul.f32 0.01, %v147_v62  ;;  %vm151_vm2 = vcmp.gt.f32.partialorder %v147_v62, 0.0 }
  0x9d   :  { %v154_v1 = vsel %vm150_vm1, %v134_v60, %v152_v63 }
  0x9e   :  { %v156_v2 = vpack.c.bf16 %v154_v1, %v154_v1  ;;  %v155_v3 = vsel %vm151_vm2, %v147_v62, %v153_v0  ;;  %v412_v19 = vpop.permute.xlu0 %411 }
  0x9f   :  { %v157_v4 = vpack.c.bf16 %v155_v3, %v155_v3  ;;  %v420_v31 = vmul.f32 %v416_v24, %v412_v19  ;;  %v419_v50 = vmul.f32 %v415_v39, %v412_v19  ;;  %v677_v24 = vld [vmem:[%s1469_s9 + $0x40] sm:$0xff] }
  0xa0   :  { %v135_v5 = vpop.f32.mrf.mxu0  ;;  %364 = vmatmul.bf16.vlgmr.msra.gmra.mxu2 %v156_v2  ;;  %390 = vmatmul.bf16.vlgmr.msrb.gmra.mxu0 %v156_v2  ;;  %v442_v21 = vpop.permute.xlu1 %441 }
  0xa1   :  { %v148_v6 = vpop.f32.mrf.mxu1  ;;  %377 = vmatmul.bf16.vlgmr.msra.gmra.mxu3 %v157_v4  ;;  %403 = vmatmul.bf16.vlgmr.msrb.gmra.mxu1 %v157_v4  ;;  %v450_v41 = vmul.f32 %v446_v32, %v442_v21  ;;  %v449_v60 = vmul.f32 %v445_v51, %v442_v21  ;;  %v819_v32 = vld [vmem:[#allocation2] sm:$0x1] }
  0xa2   :  { %727 = vperm.xlu1 %1128, %v677_v24  }
  0xa8   :  { %v427_v29 = vpop.permute.xlu0 %426 }
  0xa9   :  { %v435_v36 = vmul.f32 %v431_v27, %v427_v29  ;;  %v457_v40 = vpop.permute.xlu1 %456  ;;  %v434_v53 = vmul.f32 %v430_v43, %v427_v29  ;;  %v682_v29 = vld [vmem:[%s1469_s9 + $0x68] sm:$0xff] }
  0xaa   :  { %v465_v48 = vmul.f32 %v461_v38, %v457_v40  ;;  %v464_v62 = vmul.f32 %v460_v55, %v457_v40 }
 0x11d   :  { %v391_v28 = vpop.f32.mrf.mxu0 }
 0x11e   :  { %v392_v33 = vadd.f32 %v391_v28, %v193_v25  ;;  %v404_v34 = vpop.f32.mrf.mxu1  ;;  %v680_v25 = vld [vmem:[%s1469_s9 + $0x58] sm:$0xff]  ;;  %v679_v28 = vld [vmem:[%s1469_s9 + $0x50] sm:$0xff] }
 0x11f   :  { %742 = vperm.xlu0 %1129, %v680_v25   ;;  %737 = vperm.xlu1 %1128, %v679_v28  }
 0x120   :  { %v405_v35 = vadd.f32 %v404_v34, %v392_v33  ;;  %v684_v33 = vld [vmem:[%s1469_s9 + $0x78] sm:$0xff] }
 0x122   :  { %v422_v42 = vadd.f32 %v420_v31, %v405_v35  ;;  %v683_v31 = vld [vmem:[%s1469_s9 + $0x70] sm:$0xff] }
 0x123   :  { %v365_v44 = vpop.f32.mrf.mxu2 }
 0x124   :  { %v437_v45 = vadd.f32 %v435_v36, %v422_v42  ;;  %v366_v46 = vadd.f32 %v365_v44, %v192_v37  ;;  %v378_v47 = vpop.f32.mrf.mxu3 }
 0x125   :  { %v393_v52 = vpop.f32.mrf.mxu0 }
 0x126   :  { %v379_v54 = vadd.f32 %v378_v47, %v366_v46  ;;  %v452_v56 = vadd.f32 %v450_v41, %v437_v45  ;;  %v406_v57 = vpop.f32.mrf.mxu1  ;;  %v669_v41 = vld [vmem:[%s1469_s9] sm:$0xff]  ;;  %v693_v46 = vpop.permute.xlu1 %692  ;;  %s1242_s9 = smov [#allocation9]  }
 0x127   :  { %752 = vperm.xlu0 %1129, %v682_v29   ;;  %747 = vperm.xlu1 %1128, %v681_v30   ;;  %s834_s13 = sshll.u32 %s1242_s9, 4  ;;  %s835_s13 = int_to_ptr.vmem [resolvable:$true] %s834_s13 }
 0x128   :  { %v421_v58 = vadd.f32 %v419_v50, %v379_v54  ;;  %v467_v59 = vadd.f32 %v465_v48, %v452_v56  ;;  %v698_v50 = vpop.permute.xlu0 %697 }
 0x12a   :  { %v436_v61 = vadd.f32 %v434_v53, %v421_v58  ;;  %v471_v63 = vmul.f32 0.01, %v467_v59  ;;  %vm469_vm3 = vcmp.gt.f32.partialorder %v467_v59, 0.0 }
 0x12b   :  { %v367_v0 = vpop.f32.mrf.mxu2 }
 0x12c   :  { %v451_v1 = vadd.f32 %v449_v60, %v436_v61  ;;  %v380_v2 = vpop.f32.mrf.mxu3  ;;  %v473_v3 = vsel %vm469_vm3, %v467_v59, %v471_v63 }
 0x12d   :  { %v475_v4 = vpack.c.bf16 %v473_v3, %v473_v3 }
 0x12e   :  { %v466_v5 = vadd.f32 %v464_v62, %v451_v1  ;;  %v703_v48 = vpop.permute.xlu1 %702 }
 0x12f   :  { %629 = vmatmul.bf16.vlgmr.msrb.gmra.mxu3 %v475_v4  ;;  %757 = vperm.xlu1 %1128, %v683_v31  }
 0x130   :  { %v470_v6 = vmul.f32 0.01, %v466_v5  ;;  %vm468_vm4 = vcmp.gt.f32.partialorder %v466_v5, 0.0  ;;  %762 = vperm.xlu0 %1129, %v684_v33   ;;  %v713_v53 = vpop.permute.xlu0 %712 }
 0x132   :  { %v472_v7 = vsel %vm468_vm4, %v466_v5, %v470_v6 }
 0x133   :  { %v474_v8 = vpack.c.bf16 %v472_v7, %v472_v7 }
 0x135   :  { %616 = vmatmul.bf16.vlgmr.msrb.gmra.mxu2 %v474_v8 }
 0x136   :  { %v708_v52 = vpop.permute.xlu1 %707 }
 0x137   :  { %822 = vperm.xlu1 %1128, %v819_v32  }
 0x138   :  { %v723_v56 = vpop.permute.xlu0 %722 }
 0x13e   :  { %v718_v55 = vpop.permute.xlu1 %717 }
 0x140   :  { %v733_v59 = vpop.permute.xlu0 %732 }
 0x146   :  { %v728_v58 = vpop.permute.xlu1 %727 }
 0x191   :  { %v738_v3 = vpop.permute.xlu1 %737  ;;  %v743_v7 = vpop.permute.xlu0 %742 }
 0x1b2   :  { %v630_v15 = vpop.f32.mrf.mxu3 }
 0x1b8   :  { %v617_v19 = vpop.f32.mrf.mxu2 }
 0x1b9   :  { %v618_v20 = vadd.f32 %v1130_v16, %v617_v19 }
 0x1ba   :  { %v632_v21 = vpop.f32.mrf.mxu3 }
 0x1bb   :  { %v631_v22 = vadd.f32 %v630_v15, %v618_v20  ;;  %v748_v20 = vpop.permute.xlu1 %747  ;;  %v753_v21 = vpop.permute.xlu0 %752 }
 0x1bd   :  { %vm634_vm5 = vcmp.gt.f32.partialorder %v631_v22, 0.0  ;;  %v635_v23 = vmul.f32 0.01, %v631_v22 }
 0x1bf   :  { %v636_v26 = vsel %vm634_vm5, %v631_v22, %v635_v23 }
 0x1c0   :  { %v619_v27 = vpop.f32.mrf.mxu2  ;;  %637 = vxpose.xlu2.b32.start.end [1/1] (short) %v636_v26, 128 }
 0x222   :  { %1127 = vset.pattern.permute.xlu2 %v1238_v49 }
 0x259   :  { %v653_v34 = vpop.trf.xlu2 }
 0x261   :  { %v654_v35 = vpop.trf.xlu2 }
 0x262   :  { %v766_v60 = vmul.f32 %v693_v46, %v654_v35 }
 0x264   :  { %v783_v0 = vsel %vm781_vm6, %v766_v60, 0.0 }
 0x269   :  { %v655_v36 = vpop.trf.xlu2 }
 0x26a   :  { %v767_v62 = vmul.f32 %v698_v50, %v655_v36 }
 0x26c   :  { %v785_v5 = vsel %vm781_vm6, %v767_v62, 0.0 }
 0x271   :  { %v656_v37 = vpop.trf.xlu2 }
 0x272   :  { %v768_v1 = vmul.f32 %v703_v48, %v656_v37  ;;  %v758_v37 = vpop.permute.xlu1 %757 }
 0x274   :  { %v787_v9 = vsel %vm781_vm6, %v768_v1, 0.0 }
 0x279   :  { %v657_v38 = vpop.trf.xlu2 }
 0x27a   :  { %v769_v6 = vmul.f32 %v708_v52, %v657_v38  ;;  %v763_v38 = vpop.permute.xlu0 %762 }
 0x27c   :  { %v789_v12 = vsel %vm781_vm6, %v769_v6, 0.0 }
 0x281   :  { %v658_v39 = vpop.trf.xlu2 }
 0x282   :  { %v770_v10 = vmul.f32 %v713_v53, %v658_v39 }
 0x284   :  { %v791_v15 = vsel %vm781_vm6, %v770_v10, 0.0 }
 0x289   :  { %v659_v40 = vpop.trf.xlu2 }
 0x28a   :  { %v771_v13 = vmul.f32 %v718_v55, %v659_v40  ;;  %v823_v55 = vpop.permute.xlu1 %822 }
 0x28c   :  { %v793_v18 = vsel %vm781_vm6, %v771_v13, 0.0 }
 0x291   :  { %v660_v42 = vpop.trf.xlu2 }
 0x292   :  { %v772_v16 = vmul.f32 %v723_v56, %v660_v42 }
 0x294   :  { %v795_v23 = vsel %vm781_vm6, %v772_v16, 0.0 }
 0x299   :  { %v661_v43 = vpop.trf.xlu2 }
 0x29a   :  { %v773_v19 = vmul.f32 %v728_v58, %v661_v43 }
 0x29c   :  { %v797_v26 = vsel %vm781_vm6, %v773_v19, 0.0 }
 0x2a1   :  { %687 = vperm.xlu2 %1127, %v669_v41   ;;  %v662_v49 = vpop.trf.xlu2 }
 0x2a2   :  { %v774_v24 = vmul.f32 %v733_v59, %v662_v49 }
 0x2a4   :  { %v799_v29 = vsel %vm781_vm6, %v774_v24, 0.0 }
 0x2a9   :  { %v663_v44 = vpop.trf.xlu2 }
 0x2aa   :  { %v775_v27 = vmul.f32 %v738_v3, %v663_v44 }
 0x2ac   :  { %v801_v32 = vsel %vm781_vm6, %v775_v27, 0.0 }
 0x2b1   :  { %v664_v45 = vpop.trf.xlu2 }
 0x2b2   :  { %v776_v30 = vmul.f32 %v743_v7, %v664_v45 }
 0x2b4   :  { %v803_v35 = vsel %vm781_vm6, %v776_v30, 0.0 }
 0x2b9   :  { %v665_v47 = vpop.trf.xlu2 }
 0x2ba   :  { %v777_v33 = vmul.f32 %v748_v20, %v665_v47 }
 0x2bc   :  { %v805_v40 = vsel %vm781_vm6, %v777_v33, 0.0 }
 0x2c1   :  { %v666_v51 = vpop.trf.xlu2 }
 0x2c2   :  { %v778_v36 = vmul.f32 %v753_v21, %v666_v51 }
 0x2c4   :  { %v807_v43 = vsel %vm781_vm6, %v778_v36, 0.0 }
 0x2c9   :  { %v667_v54 = vpop.trf.xlu2 }
 0x2ca   :  { %v779_v41 = vmul.f32 %v758_v37, %v667_v54  ;;  %v825_v54 = vperm.slane %v823_v55, 0 }
 0x2cc   :  { %v809_v45 = vsel %vm781_vm6, %v779_v41, 0.0 }
 0x2d1   :  { %v668_v57 = vpop.trf.xlu2 }
 0x2d2   :  { %v780_v49 = vmul.f32 %v763_v38, %v668_v57 }
 0x2d4   :  { %v811_v47 = vsel %vm781_vm6, %v780_v49, 0.0 }
 0x2fb   :  { %v688_v61 = vpop.permute.xlu2 %687 }
 0x2fc   :  { %v765_v63 = vmul.f32 %v688_v61, %v653_v34 }
 0x2fe   :  { %v782_v2 = vsel %vm781_vm6, %v765_v63, 0.0 }
 0x2ff   :  { %v784_v4 = vadd.f32 %v783_v0, %v782_v2 }
 0x301   :  { %v786_v8 = vadd.f32 %v785_v5, %v784_v4 }
 0x303   :  { %v788_v11 = vadd.f32 %v787_v9, %v786_v8 }
 0x305   :  { %v790_v14 = vadd.f32 %v789_v12, %v788_v11 }
 0x307   :  { %v792_v17 = vadd.f32 %v791_v15, %v790_v14 }
 0x309   :  { %v794_v22 = vadd.f32 %v793_v18, %v792_v17 }
 0x30b   :  { %v796_v25 = vadd.f32 %v795_v23, %v794_v22 }
 0x30d   :  { %v798_v28 = vadd.f32 %v797_v26, %v796_v25 }
 0x30f   :  { %v800_v31 = vadd.f32 %v799_v29, %v798_v28 }
 0x311   :  { %v802_v34 = vadd.f32 %v801_v32, %v800_v31 }
 0x313   :  { %v804_v39 = vadd.f32 %v803_v35, %v802_v34 }
 0x315   :  { %v806_v42 = vadd.f32 %v805_v40, %v804_v39 }
 0x317   :  { %v808_v44 = vadd.f32 %v807_v43, %v806_v42 }
 0x319   :  { %v810_v46 = vadd.f32 %v809_v45, %v808_v44 }
 0x31b   :  { %v812_v48 = vadd.f32 %v811_v47, %v810_v46 }
 0x31d   :  { %v813_v50 = vrot.slane %v812_v48, 4 }
 0x31f   :  { %v814_v52 = vadd.f32 %v813_v50, %v812_v48 }
 0x321   :  { %v815_v51 = vrot.slane %v814_v52, 2 }
 0x323   :  { %v816_v53 = vadd.f32 %v815_v51, %v814_v52 }
 0x325   :  { %v817_v56 = vrot.slane %v816_v53, 1 }
 0x327   :  { %v818_v57 = vadd.f32 %v817_v56, %v816_v53 }
 0x329   :  { %v826_v58 = vadd.f32 %v825_v54, %v818_v57 }
 0x32b   :  { %828 = vst.msk [vmem:[#allocation9] sm:$0x1] %vm827_vm7, %v826_v58 }
 0x32c   :  { %839 = dma.vmem_to_hbm [thread:$0]  %s835_s13, 16, %s837_s4, [#allocation5]  }
 0x32d   :  { %1231 = dma.done.wait [#allocation5], 16  }
 0x32e   :  { %1232 = vsyncadd [#allocation5], 4294967280 }
 0x32f   :  { %844 = vsyncpa [#allocation4], 1 }
 0x330   :  { %845 = vsyncpa [#allocation7], 1 }
 0x331   :  { %846 = vsyncpa [#allocation5], 1 }

</bundles_post_ra>
